<compile_context>
chip_gen: v7x
topology: tpu7x:2x2x1
jax: 0.10.0
libtpu: 0.0.40
codegen_flags: <defaults>
</compile_context>

<pallas_src>
import functools

import jax
import jax.numpy as jnp
from jax.experimental import pallas as pl
from jax.experimental.pallas import tpu as pltpu


def _round_up(x, m):
    return ((x + m - 1) // m) * m


def sine_layer_kernel(x_ref, w_ref, b_ref, o_ref, *, compute_dtype):
    # Cast the x tile to the MXU operand dtype *inside* the kernel (no separate
    # XLA pad/cast pass over the activation).  No-op when x already arrives in
    # `compute_dtype` (chained SIREN layers).
    x = x_ref[...].astype(compute_dtype)
    # MXU matmul, f32 accumulation.  omega_0 is already folded into w/b.
    z = jnp.dot(x, w_ref[...], preferred_element_type=jnp.float32)
    z = z + b_ref[...]                       # (tm, Np) + (1, Np), f32 (VPU)
    o_ref[...] = jnp.sin(z).astype(o_ref.dtype)   # EUP sin, cast only at store


def prepare_sine_layer_params(weight, bias, *, omega_0=30.0,
                              compute_dtype=jnp.bfloat16, pad_in_to=None):
    """One-time parameter prep (once per SIREN layer, not per call).

      - fold omega_0:  sin(omega*(x@W^T + b)) == sin(x@(omega*W)^T + omega*b)
      - pre-transpose W to (K, N)
      - pad N up to a multiple of 128 (lane-dense stores); K is NOT padded to
        128 — set `pad_in_to` only when this layer consumes the *padded*
        output of a previous layer (extra rows are zero, contributing nothing)
      - cast the matmul operand to `compute_dtype` (bf16 MXU path); bias and
        the whole epilogue stay f32.  Use compute_dtype=jnp.float32 for the
        first layer if the omega-scaled bf16 phase error matters.
    Returns (w_t (Kp, Np), b (1, Np) f32, (K_logical, N_logical))."""
    N, K = weight.shape
    Kp = K if pad_in_to is None else int(pad_in_to)
    assert Kp >= K
    Np = _round_up(N, 128)

    w_t = (omega_0 * weight).T.astype(compute_dtype)      # (K, N)
    w_t = jnp.pad(w_t, ((0, Kp - K), (0, Np - N)))        # (Kp, Np)
    if bias is None:
        b = jnp.zeros((N,), jnp.float32)
    else:
        b = (omega_0 * bias).astype(jnp.float32)
    b = jnp.pad(b, (0, Np - N)).reshape(1, Np)            # (1, Np), f32
    return w_t, b, (K, N)


def sine_layer(x, w_t, b, logical_kn, *, out_dtype=jnp.bfloat16, tm=None,
               keep_padded=False, interpret=False):
    """sin(omega_0*(x @ W^T + b)) with pre-prepared (omega-folded, N-padded)
    parameters.  x: (M, Kp) where Kp == w_t.shape[0] (logical K, or a previous
    layer's padded width).  Returns (M, N) — or (M, Np) if keep_padded."""
    M, Kx = x.shape
    Kp, Np = w_t.shape
    _, N = logical_kn
    assert Kx == Kp, f"x width {Kx} != prepared weight rows {Kp}"
    compute_dtype = w_t.dtype

    # ---- batch tile: minimize ragged waste, feed both v7x TensorCores -------
    if tm is None:
        tm_cap = 2048 if max(Kp, Np) <= 512 else (1024 if max(Kp, Np) <= 1024
                                                  else 512)
        n_steps = max(1, pl.cdiv(M, tm_cap))
        if n_steps == 1 and M >= 256:
            n_steps = 2                      # >=2 "parallel" steps for megacore
        tm = max(8, min(tm_cap, _round_up(pl.cdiv(M, n_steps), 8)))
    grid = (pl.cdiv(M, tm),)
    # Ragged last tile (M % tm != 0) is handled by Pallas partial blocks —
    # no wrapper jnp.pad over x, no M-slice on the output.

    # ---- explicit VMEM budget (default scoped limits are only 16/32 MiB) ----
    w_bytes = Kp * Np * jnp.dtype(compute_dtype).itemsize
    single_buffer_w = w_bytes >= (4 << 20)   # invariant weight: 1 buffer suffices
    vmem_bytes = (w_bytes * (1 if single_buffer_w else 2)
                  + 2 * Np * 4                                      # bias bufs
                  + 2 * tm * Kp * jnp.dtype(x.dtype).itemsize       # x tiles
                  + 2 * tm * Np * jnp.dtype(out_dtype).itemsize)    # out tiles
    vmem_limit = int(min(64 << 20,
                         max(vmem_bytes + vmem_bytes // 2 + (1 << 20),
                             16 << 20)))

    if single_buffer_w:
        w_spec = pl.BlockSpec((Kp, Np), lambda i: (0, 0),
                              pipeline_mode=pl.Buffered(1))
    else:
        w_spec = pl.BlockSpec((Kp, Np), lambda i: (0, 0))

    out = pl.pallas_call(
        functools.partial(sine_layer_kernel, compute_dtype=compute_dtype),
        out_shape=jax.ShapeDtypeStruct((M, Np), out_dtype),
        grid_spec=pltpu.PrefetchScalarGridSpec(
            num_scalar_prefetch=0,
            grid=grid,
            in_specs=[
                pl.BlockSpec((tm, Kp), lambda i: (i, 0)),   # x tile
                w_spec,                                      # resident weight
                pl.BlockSpec((1, Np), lambda i: (0, 0)),     # bias row
            ],
            out_specs=pl.BlockSpec((tm, Np), lambda i: (i, 0)),
        ),
        compiler_params=pltpu.CompilerParams(
            dimension_semantics=("parallel",),
            vmem_limit_bytes=vmem_limit),
        interpret=interpret,
    )(x, w_t, b)

    # TODO(synk): once Kp*Np*itemsize no longer fits VMEM (v7x: 64 MiB physical),
    # add an N ("parallel") + K ("arbitrary") grid with an f32 VMEM accumulator
    # (pl.when init/finalize) instead of keeping the full weight resident.
    # TODO(synk): for tiny-M inference calls, split N into two "parallel"
    # 128-multiple tiles so both v7x TensorCores get work.

    if keep_padded or Np == N:
        return out                 # no extra output-sized HBM copy
    return out[:, :N]


def init_sine_layer_params(key, in_features, out_features, *, is_first=False,
                           omega_0=30.0):
    """SineLayer.init_weights (weight) + default nn.Linear bias init."""
    kw, kb = jax.random.split(key)
    if is_first:
        bound_w = 1.0 / in_features
    else:
        bound_w = float(jnp.sqrt(6.0 / in_features)) / omega_0
    weight = jax.random.uniform(kw, (out_features, in_features),
                                minval=-bound_w, maxval=bound_w,
                                dtype=jnp.float32)
    bound_b = 1.0 / float(jnp.sqrt(jnp.asarray(in_features, jnp.float32)))
    bias = jax.random.uniform(kb, (out_features,),
                              minval=-bound_b, maxval=bound_b,
                              dtype=jnp.float32)
    return weight, bias


if __name__ == "__main__":
    key = jax.random.PRNGKey(0)
    k_x, k_p1, k_p2 = jax.random.split(key, 3)

    batch, in_features, hidden = 8, 16, 32
    omega_0 = 30.0

    x = jax.random.normal(k_x, (batch, in_features), dtype=jnp.float32)
    w1, b1 = init_sine_layer_params(k_p1, in_features, hidden,
                                    is_first=True, omega_0=omega_0)
    w2, b2 = init_sine_layer_params(k_p2, hidden, hidden,
                                    is_first=False, omega_0=omega_0)

    # One-time prep.  Layer 2 consumes layer 1's *padded* bf16 output directly
    # (pad_in_to), so no intermediate slice / pad / cast passes between layers.
    w1_t, b1_p, kn1 = prepare_sine_layer_params(w1, b1, omega_0=omega_0)
    Np1 = w1_t.shape[1]
    w2_t, b2_p, kn2 = prepare_sine_layer_params(w2, b2, omega_0=omega_0,
                                                pad_in_to=Np1)

    h1_pad = sine_layer(x, w1_t, b1_p, kn1, keep_padded=True)      # (8, 128) bf16
    out2 = sine_layer(h1_pad, w2_t, b2_p, kn2)                     # (8, 32)  bf16
    out2 = jax.block_until_ready(out2)

    # --- references --------------------------------------------------------
    def ref_layer_matched(h, W, bvec, omega):
        # same bf16 rounding of the matmul operands as the kernel, f32 math
        hb = h.astype(jnp.bfloat16).astype(jnp.float32)
        wb = (omega * W).T.astype(jnp.bfloat16).astype(jnp.float32)
        z = jnp.dot(hb, wb, precision=jax.lax.Precision.HIGHEST) + omega * bvec
        return jnp.sin(z)

    def ref_layer_f32(h, W, bvec, omega):
        return jnp.sin(omega * (jnp.dot(h, W.T,
                                        precision=jax.lax.Precision.HIGHEST)
                                + bvec))

    h1_k = h1_pad[:, :hidden].astype(jnp.float32)
    out2_k = out2.astype(jnp.float32)

    ref1_m = ref_layer_matched(x, w1, b1, omega_0)
    ref2_m = ref_layer_matched(h1_k, w2, b2, omega_0)          # isolate layer 2
    ref_full = ref_layer_f32(ref_layer_f32(x, w1, b1, omega_0), w2, b2, omega_0)

    assert out2.shape == (batch, hidden)
    assert out2.dtype == jnp.bfloat16
    # tight checks vs matched-rounding references (only out-cast / accum order)
    assert jnp.allclose(h1_k, ref1_m, atol=2e-2)
    assert jnp.allclose(out2_k, ref2_m, atol=2e-2)
    # loose sanity bound vs the full-f32 reference (bf16 phase error w/ omega=30)
    assert jnp.allclose(out2_k, ref_full, atol=0.25)

    print("KERNEL_OK")
</pallas_src>

<mosaic_0001>
module attributes {stable_mosaic.version = 11 : i64} {
  func.func @sine_layer_kernel(%arg0: i32, %arg1: memref<8x16xf32, #tpu.memory_space<vmem>>, %arg2: memref<16x128xbf16, #tpu.memory_space<vmem>>, %arg3: memref<1x128xf32, #tpu.memory_space<vmem>>, %arg4: memref<8x128xbf16, #tpu.memory_space<vmem>>) attributes {dimension_semantics = [#tpu.dimension_semantics<parallel>], iteration_bounds = array<i64: 1>, scalar_prefetch = 0 : i64, scratch_operands = 0 : i64, tpu.core_type = #tpu.core_type<tc>, window_params = [{transform_indices = @transform_0, window_bounds = array<i64: 8, 16>}, {pipeline_mode = #tpu.pipeline_mode<synchronous>, transform_indices = @transform_1, window_bounds = array<i64: 16, 128>}, {pipeline_mode = #tpu.pipeline_mode<synchronous>, transform_indices = @transform_2, window_bounds = array<i64: 1, 128>}, {transform_indices = @transform_3, window_bounds = array<i64: 8, 128>}]} {
    %c0 = arith.constant 0 : index
    %c0_0 = arith.constant 0 : index
    %0 = vector.load %arg1[%c0, %c0_0] : memref<8x16xf32, #tpu.memory_space<vmem>>, vector<8x16xf32>
    %1 = arith.truncf %0 : vector<8x16xf32> to vector<8x16xbf16>
    %c0_1 = arith.constant 0 : index
    %c0_2 = arith.constant 0 : index
    %2 = vector.load %arg2[%c0_1, %c0_2] : memref<16x128xbf16, #tpu.memory_space<vmem>>, vector<16x128xbf16>
    %cst = arith.constant dense<0.000000e+00> : vector<8x128xf32>
    %3 = tpu.matmul %1, %2, %cst {dimension_numbers = #tpu.dot_dimension_numbers<[1], [0], [0], [1], [0, 0, 1, 1], [], []>} : vector<8x16xbf16>, vector<16x128xbf16>, vector<8x128xf32> -> vector<8x128xf32>
    %c0_3 = arith.constant 0 : index
    %c0_4 = arith.constant 0 : index
    %4 = vector.load %arg3[%c0_3, %c0_4] : memref<1x128xf32, #tpu.memory_space<vmem>>, vector<1x128xf32>
    %5 = vector.broadcast %4 : vector<1x128xf32> to vector<8x128xf32>
    %6 = arith.addf %3, %5 : vector<8x128xf32>
    %7 = math.sin %6 : vector<8x128xf32>
    %8 = arith.truncf %7 : vector<8x128xf32> to vector<8x128xbf16>
    %c0_5 = arith.constant 0 : index
    %c0_6 = arith.constant 0 : index
    %9 = vector.load %arg4[%c0_5, %c0_6] : memref<8x128xbf16, #tpu.memory_space<vmem>>, vector<8x128xbf16>
    tpu.vector_store %arg4[%c0_5, %c0_6], %8 {strides = array<i32>} : memref<8x128xbf16, #tpu.memory_space<vmem>>, vector<8x128xbf16>,
    return
  }
  func.func @transform_0(%arg0: i32) -> (i32, i32) {
    %c0_i32 = arith.constant 0 : i32
    %c0_i32_0 = arith.constant 0 : i32
    return %arg0, %c0_i32 : i32, i32
  }
  func.func @transform_1(%arg0: i32) -> (i32, i32) {
    %c0_i32 = arith.constant 0 : i32
    %c0_i32_0 = arith.constant 0 : i32
    %c0_i32_1 = arith.constant 0 : i32
    return %c0_i32, %c0_i32_0 : i32, i32
  }
  func.func @transform_2(%arg0: i32) -> (i32, i32) {
    %c0_i32 = arith.constant 0 : i32
    %c0_i32_0 = arith.constant 0 : i32
    %c0_i32_1 = arith.constant 0 : i32
    return %c0_i32, %c0_i32_0 : i32, i32
  }
  func.func @transform_3(%arg0: i32) -> (i32, i32) {
    %c0_i32 = arith.constant 0 : i32
    %c0_i32_0 = arith.constant 0 : i32
    return %arg0, %c0_i32 : i32, i32
  }
}

</mosaic_0001>

<bundles_post_ra>
// kernel: tpu_custom_call.1
= control target key start
LH: loop header
LB: loop body
LE: loop exit
PB: predicated region body
PF: predicated region fallthrough
CT: control target
= control target key end

     0   :  { %8 = vsyncpa [#allocation3], 0  ;;  %s434_s0 = inlined_call_operand.hbm [shape: f32[8,16], index: 0, kind: input, shape index: {}]   ;;  %s435_s1 = inlined_call_operand.hbm [shape: bf16[16,128], index: 1, kind: input, shape index: {}]   ;;  %s436_s2 = inlined_call_operand.vmem [shape: f32[1,128], index: 2, kind: input, shape index: {}]   ;;  %s437_s3 = inlined_call_operand.hbm [shape: bf16[8,128], index: 3, kind: output, shape index: {}]  }
   0x1   :  { %9 = vsyncpa [#allocation6], 0 }
   0x2   :  { %10 = vsyncpa [#allocation4], 0  ;;  %s334_s12 = smov [#allocation2]   ;;  %s335_s14 = smov [#allocation5]  }
   0x3   :  { %s17_s13 = sshll.u32 %s334_s12, 4  ;;  %s26_s15 = sshll.u32 %s335_s14, 4  ;;  %s18_s13 = int_to_ptr.vmem [resolvable:$true] %s17_s13  ;;  %s367_s15 = int_to_ptr.vmem [resolvable:$true] %s26_s15 }
   0x4   :  { %s262_s18 = scalar_lea.hbm %s434_s0, 128 }
   0x5   :  { %p263_p0 = scmp.ne.s32.totalorder %s434_s0, %s262_s18  ;;  %p266_p1 = scmp.lt.u32.totalorder %s262_s18, %s434_s0 }
   0x7   :  { %p268_p2 = pnand %p266_p1, %p263_p0 }
   0x9   :  { %271 = shalt.err (!%p268_p2)
}
   0xa   :  { %s272_s23 = scalar_lea.vmem %s18_s13, 128  ;;  %p277_p4 = scmp.lt.s32.totalorder %s18_s13, %s18_s13 }
   0xb   :  { %p273_p3 = scmp.ne.s32.totalorder %s18_s13, %s272_s23  ;;  %p278_p5 = scmp.lt.s32.totalorder %s272_s23, %s272_s23 }
   0xd   :  { %p279_p6 = por %p278_p5, %p277_p4 }
   0xf   :  { %p280_p7 = pnand %p279_p6, %p273_p3 }
  0x11   :  { %283 = shalt.err (!%p280_p7)
}
  0x12   :  { %20 = dma.hbm_to_vmem [thread:$0]  %s434_s0, 128, %s18_s13, [#allocation3]  }
  0x13   :  { %s284_s28 = scalar_lea.hbm %s435_s1, 128 }
  0x14   :  { %p285_p8 = scmp.ne.s32.totalorder %s435_s1, %s284_s28  ;;  %p288_p9 = scmp.lt.u32.totalorder %s284_s28, %s435_s1 }
  0x16   :  { %p290_p10 = pnand %p288_p9, %p285_p8 }
  0x18   :  { %293 = shalt.err (!%p290_p10)
}
  0x19   :  { %s294_s6 = scalar_lea.vmem %s367_s15, 128  ;;  %p299_p12 = scmp.lt.s32.totalorder %s367_s15, %s367_s15 }
  0x1a   :  { %p295_p11 = scmp.ne.s32.totalorder %s367_s15, %s294_s6  ;;  %p300_p13 = scmp.lt.s32.totalorder %s294_s6, %s294_s6 }
  0x1c   :  { %p301_p0 = por %p300_p13, %p299_p12 }
  0x1e   :  { %p302_p1 = pnand %p301_p0, %p295_p11 }
  0x20   :  { %305 = shalt.err (!%p302_p1)
}
  0x21   :  { %s336_s0 = smov 64   ;;  %s337_s7 = smov 4  }
  0x22   :  { %32 = dma.hbm_to_vmem [thread:$0]  %s435_s1, 128, %s367_s15, [#allocation6], %s336_s0, %s336_s0, %s337_s7  }
  0x23   :  { %328 = dma.done.wait [#allocation3], 128  }
  0x24   :  { %329 = vsyncadd [#allocation3], 4294967168 }
  0x25   :  { %330 = dma.done.wait [#allocation6], 128  }
  0x26   :  { %331 = vsyncadd [#allocation6], 4294967168  ;;  %v338_v0 = vmov 0.0   ;;  %vm339_vm0 = vmmov 0   ;;  %v257_v1 = vld [vmem:[#allocation5] sm:$0xff]   ;;  %v42_v2 = vld [vmem:[#allocation2] sm:$0xff] }
  0x27   :  { %234 = vmatprep.subr.bf16.mxu0 %v338_v0  ;;  %236 = vmatprep.mubr.msk.bf16.mxu0 %vm339_vm0, %v338_v0  ;;  %v43_v3 = vpack.c.bf16 %v42_v2, %v42_v2  ;;  %vm59_vm1 = vcmask 130048   ;;  %v225_v4 = vld [vmem:[%s436_s2] ss:$0 sm:$0xff]  ;;  %v340_v20 = vmov 683565275   ;;  %s346_s1 = smov [#allocation7]  }
  0x28   :  { %235 = vmatpush3.bf16.msra.mxu0 %v257_v1  ;;  %v341_v22 = vmov 2475754826   ;;  %v342_v25 = vmov 2131351028   ;;  %v343_v28 = vmov 2102212464  }
  0x29   :  { %v344_v31 = vmov 920167782   ;;  %v345_v34 = vmov 1326507024   ;;  %s215_s2 = sshll.u32 %s346_s1, 4  ;;  %s216_s2 = int_to_ptr.vmem [resolvable:$true] %s215_s2 }
  0x2a   :  { %s306_s12 = scalar_lea.vmem %s216_s2, 64  ;;  %p311_p3 = scmp.lt.s32.totalorder %s216_s2, %s216_s2 }
  0x2b   :  { %237 = vmatmul.mubr.msk.bf16.vlgmr.msra.gmra.mrb[0].mxu0 %vm59_vm1, %v43_v3  ;;  %p307_p2 = scmp.ne.s32.totalorder %s216_s2, %s306_s12  ;;  %p312_p4 = scmp.lt.s32.totalorder %s306_s12, %s306_s12 }
  0x2d   :  { %p313_p5 = por %p312_p4, %p311_p3 }
  0x2f   :  { %p314_p6 = pnand %p313_p5, %p307_p2 }
  0xfe   :  { %v97_v5 = vpop.f32.mrb[0].mxu0 }
  0xff   :  { %v401_v6 = vadd.f32 %v225_v4, %v97_v5  ;;  %v238_v7 = vpop.f32.mrb[1].mxu0 }
 0x100   :  { %v100_v8 = vpop.f32.mrb[2].mxu0 }
 0x101   :  { %v106_v9 = vand.u32 2139095040, %v401_v6  ;;  %v239_v10 = vpop.f32.mrb[3].mxu0  ;;  %v103_v14 = vand.u32 2147483647, %v401_v6  ;;  %vm105_vm9 = vcmp.lt.s32.totalorder %v401_v6, 0  ;;  %vm195_vm14 = vweird.f32 %v401_v6 }
 0x103   :  { %v107_v11 = vshrl.u32 %v106_v9, 23  ;;  %v110_v17 = vand.u32 8388607, %v103_v14  ;;  %vm104_vm10 = vcmp.le.f32.partialorder %v103_v14, 0.7853982 }
 0x105   :  { %v228_v12 = vadd.s32 4294967169, %v107_v11  ;;  %v111_v36 = vor.u32 8388608, %v110_v17 }
 0x107   :  { %v113_v13 = vadd.s32 1, %v228_v12  ;;  %v151_v50 = vshll.u32 %v111_v36, 8 }
 0x109   :  { %vm114_vm2 = vcmp.gt.s32.totalorder %v113_v13, 0 }
 0x10a   :  { %v115_v15 = vsel %vm114_vm2, %v113_v13, 0 }
 0x10b   :  { %v117_v16 = vand.u32 31, %v115_v15  ;;  %v116_v19 = vshrl.u32 %v115_v15, 5 }
 0x10d   :  { %v118_v18 = vsub.s32 32, %v117_v16  ;;  %v120_v21 = vshll.u32 %v340_v20, %v117_v16  ;;  %v123_v23 = vshll.u32 %v341_v22, %v117_v16  ;;  %v126_v27 = vshll.u32 %v342_v25, %v117_v16 }
 0x10e   :  { %v129_v30 = vshll.u32 %v343_v28, %v117_v16  ;;  %v132_v33 = vshll.u32 %v344_v31, %v117_v16  ;;  %vm135_vm3 = vcmp.lt.s32.totalorder %v116_v19, 1  ;;  %vm138_vm4 = vcmp.lt.s32.totalorder %v116_v19, 4 }
 0x10f   :  { %v121_v24 = vshrl.u32 %v341_v22, %v118_v18  ;;  %v124_v26 = vshrl.u32 %v342_v25, %v118_v18  ;;  %v127_v29 = vshrl.u32 %v343_v28, %v118_v18  ;;  %v130_v32 = vshrl.u32 %v344_v31, %v118_v18 }
 0x110   :  { %v133_v35 = vshrl.u32 %v345_v34, %v118_v18  ;;  %v119_v45 = vshrl.u32 %v340_v20, %v118_v18  ;;  %vm137_vm5 = vcmp.lt.s32.totalorder %v116_v19, 3  ;;  %vm136_vm6 = vcmp.lt.s32.totalorder %v116_v19, 2 }
 0x111   :  { %v122_v37 = vor.u32 %v121_v24, %v120_v21  ;;  %v125_v38 = vor.u32 %v124_v26, %v123_v23  ;;  %v128_v39 = vor.u32 %v127_v29, %v126_v27  ;;  %v131_v40 = vor.u32 %v130_v32, %v129_v30 }
 0x112   :  { %v134_v41 = vor.u32 %v133_v35, %v132_v33 }
 0x113   :  { %v140_v42 = vsel %vm138_vm4, %v128_v39, 2102212464  ;;  %v143_v43 = vsel %vm135_vm3, %v122_v37, %v125_v38  ;;  %v147_v44 = vsel %vm135_vm3, %v125_v38, %v128_v39  ;;  %v144_v46 = vsel %vm138_vm4, %v131_v40, 920167782 }
 0x114   :  { %v148_v47 = vsel %vm138_vm4, %v134_v41, 1326507024  ;;  %v145_v48 = vsel %vm137_vm5, %v128_v39, %v144_v46  ;;  %v139_v51 = vsel %vm135_vm3, %v119_v45, %v122_v37  ;;  %v141_v52 = vsel %vm137_vm5, %v125_v38, %v140_v42 }
 0x115   :  { %v149_v49 = vsel %vm137_vm5, %v131_v40, %v148_v47  ;;  %v146_v53 = vsel %vm136_vm6, %v143_v43, %v145_v48  ;;  %v142_v59 = vsel %vm136_vm6, %v139_v51, %v141_v52 }
 0x116   :  { %v150_v54 = vsel %vm136_vm6, %v147_v44, %v149_v49  ;;  %v410_v57 = vmul.u32.u64.low %v151_v50, %v146_v53  ;;  %v411_v58 = vmul.u32.u64.high %v151_v50, %v146_v53, %v410_v57  ;;  %v158_v61 = vmul.u32 %v151_v50, %v142_v59 }
 0x117   :  { %v407_v55 = vmul.u32.u64.low %v151_v50, %v150_v54  ;;  %v408_v56 = vmul.u32.u64.high %v151_v50, %v150_v54, %v407_v55 }
 0x118   :  { %v161_v60 = vadd.s32 1, %v411_v58 }
 0x119   :  { %vm160_vm7 = vc.u32 %v408_v56, %v410_v57  ;;  %v159_v10 = vadd.s32 %v410_v57, %v408_v56 }
 0x11a   :  { %v162_v62 = vsel %vm160_vm7, %v161_v60, %v411_v58 }
 0x11b   :  { %v163_v63 = vadd.s32 %v162_v62, %v158_v61 }
 0x11d   :  { %v164_v0 = vadd.s32 536870912, %v163_v63 }
 0x11f   :  { %v165_v1 = vshrl.u32 %v164_v0, 30 }
 0x121   :  { %v166_v2 = vshll.u32 %v165_v1, 30  ;;  %v189_v23 = vsub.s32 4, %v165_v1 }
 0x123   :  { %v167_v3 = vsub.s32 %v163_v63, %v166_v2  ;;  %v190_v26 = vsel %vm105_vm9, %v189_v23, %v165_v1 }
 0x124   :  { %v192_v28 = vsel %vm104_vm10, 0, %v190_v26 }
 0x125   :  { %v169_v4 = vsub.s32 0, %v167_v3  ;;  %v196_v29 = vadd.s32 3, %v192_v28 }
 0x127   :  { %v229_v5 = vmin.u32 %v169_v4, %v167_v3  ;;  %v197_v30 = vand.u32 3, %v196_v29 }
 0x129   :  { %v171_v7 = vclz %v229_v5  ;;  %vm202_vm11 = vcmp.eq.s32.totalorder %v197_v30, 2  ;;  %vm199_vm12 = vcmp.eq.s32.totalorder %v197_v30, 0  ;;  %vm198_vm13 = vcmp.lt.s32.totalorder %v197_v30, 2 }
 0x12b   :  { %v230_v8 = vadd.s32 4294967294, %v171_v7 }
 0x12d   :  { %vm231_vm8 = vcmp.lt.s32.totalorder %v230_v8, 0 }
 0x12e   :  { %v174_v9 = vsel %vm231_vm8, 0, %v230_v8 }
 0x12f   :  { %v175_v11 = vsub.s32 32, %v174_v9  ;;  %v179_v12 = vsub.s32 4294967266, %v174_v9  ;;  %v176_v13 = vshll.u32 %v167_v3, %v174_v9 }
 0x131   :  { %v177_v15 = vshrl.u32 %v159_v10, %v175_v11  ;;  %v180_v16 = vadd.s32 127, %v179_v12 }
 0x133   :  { %v178_v17 = vor.u32 %v177_v15, %v176_v13  ;;  %v181_v18 = vshll.u32 %v180_v16, 23 }
 0x135   :  { %v182_v19 = vor.u32 4788187, %v181_v18  ;;  %v185_v21 = vcvt.s32.f32 %v178_v17 }
 0x137   :  { %v183_v20 = vand.u32 2147483647, %v182_v19 }
 0x139   :  { %v186_v22 = vmul.f32 %v185_v21, %v183_v20 }
 0x13b   :  { %v187_v24 = vxor.u32 2147483648, %v186_v22 }
 0x13d   :  { %v188_v25 = vsel %vm105_vm9, %v187_v24, %v186_v22 }
 0x13e   :  { %v191_v27 = vsel %vm104_vm10, %v401_v6, %v188_v25 }
 0x13f   :  { %258 = vcosq.f32 %v191_v27 }
 0x140   :  { %260 = vsinq.f32 %v191_v27 }
 0x149   :  { %v259_v31 = vpop.eup %258 }
 0x14a   :  { %v261_v32 = vpop.eup %260  ;;  %v203_v33 = vxor.u32 2147483648, %v259_v31 }
 0x14b   :  { %v200_v34 = vxor.u32 2147483648, %v261_v32 }
 0x14c   :  { %v204_v35 = vsel %vm202_vm11, %v203_v33, %v261_v32 }
 0x14d   :  { %v201_v36 = vsel %vm199_vm12, %v259_v31, %v200_v34 }
 0x14e   :  { %v205_v14 = vsel %vm198_vm13, %v201_v36, %v204_v35 }
 0x14f   :  { %v206_v37 = vsel %vm195_vm14, nan, %v205_v14 }
 0x150   :  { %v207_v38 = vpack.c.bf16 %v206_v37, %v206_v37 }
 0x152   :  { %208 = vst [vmem:[#allocation7] sm:$0xf] %v207_v38 }
 0x153   :  { %317 = shalt.err (!%p314_p6)
}
 0x154   :  { %s318_s15 = scalar_lea.hbm %s437_s3, 64 }
 0x155   :  { %p319_p7 = scmp.ne.s32.totalorder %s437_s3, %s318_s15  ;;  %p322_p8 = scmp.lt.u32.totalorder %s318_s15, %s437_s3 }
 0x157   :  { %p324_p9 = pnand %p322_p8, %p319_p7 }
 0x159   :  { %327 = shalt.err (!%p324_p9)
}
 0x15a   :  { %218 = dma.vmem_to_hbm [thread:$0]  %s216_s2, 64, %s437_s3, [#allocation4]  }
 0x15b   :  { %332 = dma.done.wait [#allocation4], 64  }
 0x15c   :  { %333 = vsyncadd [#allocation4], 4294967232 }
 0x15d   :  { %222 = vsyncpa [#allocation3], 1 }
 0x15e   :  { %223 = vsyncpa [#allocation6], 1 }
 0x15f   :  { %224 = vsyncpa [#allocation4], 1 }

</bundles_post_ra>
